<compile_context>
chip_gen: v6e
topology: v6e:2x2x1
jax: 0.10.0
libtpu: 0.0.40
codegen_flags: <defaults>
</compile_context>

<pallas_src>
import functools
import math

import jax
import jax.numpy as jnp
from jax import lax
from jax.experimental import pallas as pl
from jax.experimental.pallas import tpu as pltpu

EPS = 1e-12  # torch.nn.functional.normalize default eps


def _round_up(x, n):
    return (x + n - 1) // n * n


# --------------------------------------------------------------------------
# Stage 1: per-row inverse L2 norms  (1 / max(||row||, eps))
# --------------------------------------------------------------------------
def _row_inv_norm_kernel(x_ref, o_ref):
    x = x_ref[...].astype(jnp.float32)
    sumsq = jnp.sum(x * x, axis=-1, keepdims=True)          # (T, 1)
    # x / max(||x||, eps)  ==  x * rsqrt(max(||x||^2, eps^2))
    o_ref[...] = lax.rsqrt(jnp.maximum(sumsq, EPS * EPS))


def _row_inv_norms(x, tile_rows):
    n, f = x.shape
    return pl.pallas_call(
        _row_inv_norm_kernel,
        out_shape=jax.ShapeDtypeStruct((n, 1), jnp.float32),
        grid_spec=pltpu.PrefetchScalarGridSpec(
            num_scalar_prefetch=0,
            grid=(n // tile_rows,),
            in_specs=[pl.BlockSpec((tile_rows, f), lambda i: (i, 0))],
            out_specs=pl.BlockSpec((tile_rows, 1), lambda i: (i, 0)),
        ),
        compiler_params=pltpu.CompilerParams(
            dimension_semantics=("parallel",)),
    )(x)


# --------------------------------------------------------------------------
# Stage 2: tiled cosine logits (+ optional CosFace margin)
# --------------------------------------------------------------------------
def _cosface_logits_kernel(x_ref, w_ref, nx_ref, nw_ref, o_ref):
    # (TB, F) x (TC, F) contracted on the last dims -> (TB, TC); no transpose.
    raw = lax.dot_general(
        x_ref[...], w_ref[...],
        dimension_numbers=(((1,), (1,)), ((), ())),
        preferred_element_type=jnp.float32)
    o_ref[...] = (raw * nx_ref[...] * nw_ref[...]).astype(o_ref.dtype)


def _cosface_margin_kernel(label_ref, x_ref, w_ref, nx_ref, nw_ref, o_ref,
                           *, s, m, tile_c):
    raw = lax.dot_general(
        x_ref[...], w_ref[...],
        dimension_numbers=(((1,), (1,)), ((), ())),
        preferred_element_type=jnp.float32)
    logits = raw * nx_ref[...] * nw_ref[...]                  # (TB, TC)
    col0 = pl.program_id(1) * tile_c                          # class-tile offset
    class_ids = lax.broadcasted_iota(jnp.int32, logits.shape, 1) + col0
    labels = label_ref[...]                                   # (TB, 1) int32
    # (logits - one_hot * m) * s, without materializing a one_hot temporary.
    o_ref[...] = jnp.where(class_ids == labels,
                           (logits - m) * s,
                           logits * s).astype(o_ref.dtype)


def cosface_forward(x, W, label=None, s=30.0, m=0.35,
                    tile_b=128, tile_c=256):
    """JAX/Pallas equivalent of CosFace.forward.

    x: (B, num_features);  W: (num_classes, num_features);
    label: optional (B,) int array.
    Inputs may be f32 or bf16 — operands feed the MXU in their native dtype
    with f32 accumulation; all normalization math is f32.
    """
    B, F = x.shape
    C, F2 = W.shape
    assert F == F2

    # Tile sizes: keep TB a multiple of 8 and TC a multiple of 128
    # (lane-dense output); pad arrays up to tile multiples.
    tb = tile_b if B >= tile_b else _round_up(B, 8)
    tc = tile_c if C >= tile_c else _round_up(C, 128)
    Bp = _round_up(B, tb)
    Cp = _round_up(C, tc)

    x_p = x if Bp == B else jnp.pad(x, ((0, Bp - B), (0, 0)))
    W_p = W if Cp == C else jnp.pad(W, ((0, Cp - C), (0, 0)))

    # Precompute inverse row norms once (not per batch/class tile).
    inv_nx = _row_inv_norms(x_p, tb)                      # (Bp, 1)
    inv_nw = _row_inv_norms(W_p, tc).reshape(1, Cp)       # (1, Cp) column-bcast

    grid = (Bp // tb, Cp // tc)
    out_shape = jax.ShapeDtypeStruct((Bp, Cp), jnp.float32)
    cparams = pltpu.CompilerParams(
        dimension_semantics=("parallel", "parallel"),
        vmem_limit_bytes=32 * 1024 * 1024,
    )

    x_spec = pl.BlockSpec((tb, F), lambda i, j: (i, 0))
    w_spec = pl.BlockSpec((tc, F), lambda i, j: (j, 0))
    nx_spec = pl.BlockSpec((tb, 1), lambda i, j: (i, 0))
    nw_spec = pl.BlockSpec((1, tc), lambda i, j: (0, j))
    o_spec = pl.BlockSpec((tb, tc), lambda i, j: (i, j))

    if label is None:
        out = pl.pallas_call(
            _cosface_logits_kernel,
            out_shape=out_shape,
            grid_spec=pltpu.PrefetchScalarGridSpec(
                num_scalar_prefetch=0,
                grid=grid,
                in_specs=[x_spec, w_spec, nx_spec, nw_spec],
                out_specs=o_spec,
            ),
            compiler_params=cparams,
        )(x_p, W_p, inv_nx, inv_nw)
    else:
        lab = label.astype(jnp.int32).reshape(B, 1)
        lab_p = lab if Bp == B else jnp.pad(lab, ((0, Bp - B), (0, 0)),
                                            constant_values=-1)
        kernel = functools.partial(_cosface_margin_kernel, s=s, m=m, tile_c=tc)
        out = pl.pallas_call(
            kernel,
            out_shape=out_shape,
            grid_spec=pltpu.PrefetchScalarGridSpec(
                num_scalar_prefetch=0,
                grid=grid,
                in_specs=[pl.BlockSpec((tb, 1), lambda i, j: (i, 0)),
                          x_spec, w_spec, nx_spec, nw_spec],
                out_specs=o_spec,
            ),
            compiler_params=cparams,
        )(lab_p, x_p, W_p, inv_nx, inv_nw)

    return out[:B, :C]


def xavier_uniform(key, shape, dtype=jnp.float32):
    # nn.init.xavier_uniform_ on a (num_classes, num_features) Parameter:
    # fan_in = num_features, fan_out = num_classes
    fan_out, fan_in = shape
    bound = math.sqrt(6.0 / (fan_in + fan_out))
    return jax.random.uniform(key, shape, dtype, minval=-bound, maxval=bound)


if __name__ == "__main__":
    num_features = 32
    num_classes = 16
    batch = 8
    s, m = 30.0, 0.35

    key = jax.random.PRNGKey(0)
    k_w, k_x, k_l = jax.random.split(key, 3)

    W = xavier_uniform(k_w, (num_classes, num_features))
    x = jax.random.normal(k_x, (batch, num_features), dtype=jnp.float32)
    label = jax.random.randint(k_l, (batch,), 0, num_classes, dtype=jnp.int32)

    # Path 1: label is None -> plain normalized cosine logits
    logits = cosface_forward(x, W, label=None, s=s, m=m)
    # Path 2: with label -> margin-subtracted, scaled output
    out = cosface_forward(x, W, label=label, s=s, m=m)

    jax.block_until_ready(logits)
    jax.block_until_ready(out)

    # Plain-JAX reference check
    xn = x / jnp.maximum(jnp.linalg.norm(x, axis=1, keepdims=True), EPS)
    wn = W / jnp.maximum(jnp.linalg.norm(W, axis=1, keepdims=True), EPS)
    ref_logits = xn @ wn.T
    one_hot = jax.nn.one_hot(label, num_classes, dtype=jnp.float32)
    ref_out = (ref_logits - one_hot * m) * s

    assert logits.shape == (batch, num_classes)
    assert out.shape == (batch, num_classes)
    assert jnp.allclose(logits, ref_logits, atol=3e-5, rtol=1e-5)
    assert jnp.allclose(out, ref_out, atol=1e-3, rtol=1e-5)

    print("KERNEL_OK")
</pallas_src>

<mosaic_0001>
module attributes {stable_mosaic.version = 11 : i64} {
  func.func @_row_inv_norm_kernel(%arg0: i32, %arg1: memref<8x32xf32, #tpu.memory_space<vmem>>, %arg2: memref<8x1xf32, #tpu.memory_space<vmem>>) attributes {dimension_semantics = [#tpu.dimension_semantics<parallel>], iteration_bounds = array<i64: 1>, scalar_prefetch = 0 : i64, scratch_operands = 0 : i64, tpu.core_type = #tpu.core_type<tc>, window_params = [{transform_indices = @transform_0, window_bounds = array<i64: 8, 32>}, {transform_indices = @transform_1, window_bounds = array<i64: 8, 1>}]} {
    %c0 = arith.constant 0 : index
    %c0_0 = arith.constant 0 : index
    %0 = vector.load %arg1[%c0, %c0_0] : memref<8x32xf32, #tpu.memory_space<vmem>>, vector<8x32xf32>
    %1 = arith.mulf %0, %0 : vector<8x32xf32>
    %cst = arith.constant dense<0.000000e+00> : vector<8xf32>
    %2 = vector.multi_reduction <add>, %1, %cst [1] : vector<8x32xf32> to vector<8xf32>
    %3 = vector.shape_cast %2 : vector<8xf32> to vector<8x1xf32>
    %cst_1 = arith.constant 1.000000e-24 : f32
    %4 = vector.broadcast %cst_1 : f32 to vector<8x1xf32>
    %5 = arith.maximumf %3, %4 : vector<8x1xf32>
    %6 = math.rsqrt %5 : vector<8x1xf32>
    %c0_2 = arith.constant 0 : index
    %c0_3 = arith.constant 0 : index
    %7 = vector.load %arg2[%c0_2, %c0_3] : memref<8x1xf32, #tpu.memory_space<vmem>>, vector<8x1xf32>
    tpu.vector_store %arg2[%c0_2, %c0_3], %6 {strides = array<i32>} : memref<8x1xf32, #tpu.memory_space<vmem>>, vector<8x1xf32>,
    return
  }
  func.func @transform_0(%arg0: i32) -> (i32, i32) {
    %c0_i32 = arith.constant 0 : i32
    %c0_i32_0 = arith.constant 0 : i32
    return %arg0, %c0_i32 : i32, i32
  }
  func.func @transform_1(%arg0: i32) -> (i32, i32) {
    %c0_i32 = arith.constant 0 : i32
    %c0_i32_0 = arith.constant 0 : i32
    return %arg0, %c0_i32 : i32, i32
  }
}

</mosaic_0001>

<bundles_post_ra>
// kernel: tpu_custom_call.1
= control target key start
LH: loop header
LB: loop body
LE: loop exit
PB: predicated region body
PF: predicated region fallthrough
CT: control target
= control target key end

     0   :  { %6 = vsyncpa [#allocation3], 0  ;;  %s60_s6 = smov [#allocation2]   ;;  %s77_s0 = inlined_call_operand.hbm [shape: f32[8,32], index: 0, kind: input, shape index: {}]   ;;  %s78_s1 = inlined_call_operand.vmem [shape: f32[8,1], index: 1, kind: output, shape index: {}]  }
   0x1   :  { %s13_s7 = sshll.u32 %s60_s6, 4  ;;  %s14_s7 = int_to_ptr.vmem [resolvable:$true] %s13_s7 }
   0x2   :  { %s46_s8 = scalar_lea.vmem %s14_s7, 128  ;;  %p51_p1 = scmp.lt.s32.totalorder %s14_s7, %s14_s7 }
   0x3   :  { %p47_p0 = scmp.ne.s32.totalorder %s14_s7, %s46_s8  ;;  %p52_p2 = scmp.lt.s32.totalorder %s46_s8, %s46_s8 }
   0x5   :  { %p53_p3 = por %p52_p2, %p51_p1 }
   0x7   :  { %p54_p4 = pnand %p53_p3, %p47_p0 }
   0x9   :  { %57 = shalt.err (!%p54_p4)
}
   0xa   :  { %16 = dma.hbm_to_vmem [thread:$0]  %s77_s0, 128, %s14_s7, [#allocation3]  }
   0xb   :  { %58 = dma.done.wait [#allocation3], 128  }
   0xc   :  { %59 = vsyncadd [#allocation3], 4294967168  ;;  %v20_v0 = vld [vmem:[#allocation2] sm:$0xff]  ;;  %vm22_vm0 = vcmask 261120   ;;  %vm28_vm1 = vcmask 7168  }
   0xd   :  { %v21_v1 = vmul.f32 %v20_v0, %v20_v0 }
   0xf   :  { %v23_v2 = vsel %vm22_vm0, %v21_v1, 0.0 }
  0x10   :  { %24 = vadd.xlane.f32.xlu0 %v23_v2 }
  0x99   :  { %v25_v3 = vpop.xlane.xlu0 %24 }
  0x9a   :  { %v26_v4 = vmax.f32 %v25_v3, 1e-24 }
  0x9c   :  { %36 = vrsqrt.f32 %v26_v4 }
  0xa9   :  { %v37_v5 = vpop.eup %36 }
  0xaa   :  { %29 = vst.msk [vmem:[%s78_s1] sm:$0xff] %vm28_vm1, %v37_v5 }
  0xab   :  { %34 = vsyncpa [#allocation3], 1 }

</bundles_post_ra>
